<compile_context>
chip_gen: v7x
topology: tpu7x:2x2x1
jax: 0.10.0
libtpu: 0.0.40
codegen_flags: <defaults>
</compile_context>

<pallas_src>
import jax
import jax.numpy as jnp
from jax.experimental import pallas as pl
from jax.experimental.pallas import tpu as pltpu


def _temp_scale_kernel(temp_ref, logits_ref, labels_ref, scaled_ref, ce_ref):
    """One grid step handles a (TN, C) tile of logits.

    temp_ref   : SMEM (1,)    f32   scalar-prefetched temperature
    logits_ref : VMEM (TN, C) in-dtype
    labels_ref : VMEM (TN, 1) i32
    scaled_ref : VMEM (TN, C) in-dtype   output: logits / T
    ce_ref     : VMEM (TN, 1) f32        output: per-row cross entropy
    """
    inv_t = 1.0 / temp_ref[0]                                   # scalar (SMEM)

    # All vector compute in f32 (v5e VPU/EUP have no bf16 path).
    x = logits_ref[...].astype(jnp.float32) * inv_t             # scaled logits
    scaled_ref[...] = x.astype(scaled_ref.dtype)

    # --- per-row cross entropy without materializing the full logp tile ---
    m = jnp.max(x, axis=-1, keepdims=True)                      # (TN, 1)
    z = x - m
    lse = jnp.log(jnp.sum(jnp.exp(z), axis=-1, keepdims=True))  # (TN, 1)

    labels = labels_ref[...]                                    # (TN, 1) int32
    col = jax.lax.broadcasted_iota(jnp.int32, x.shape, 1)       # (TN, C)
    z_at_label = jnp.sum(jnp.where(col == labels, z, 0.0),
                         axis=-1, keepdims=True)                # (TN, 1)

    # CE_row = -(log softmax at label) = lse - z[label]
    # TODO(synk): PyTorch CrossEntropyLoss ignore_index=-100 is not handled;
    # calibration labels are assumed to be valid class indices.
    ce_ref[...] = lse - z_at_label


def _vmem_capacity_bytes():
    """Per-TensorCore VMEM capacity; conservative (v7x-sized) fallback."""
    try:
        return int(pltpu.get_tpu_info().vmem_capacity_bytes)
    except Exception:
        return 64 << 20


def _gen_params():
    """Generation-aware tile budget / VMEM limit / dual-TC split."""
    cap = _vmem_capacity_bytes()
    if cap >= (100 << 20):
        # v5e / v6e: 128 MiB physical VMEM, one TensorCore per chip.
        return dict(data_budget=64 << 20, max_tile=2048,
                    vmem_limit=96 << 20, split_for_two_cores=False)
    # v7x: 64 MiB VMEM per TensorCore, 2 TensorCores share the parallel grid.
    return dict(data_budget=40 << 20, max_tile=1024,
                vmem_limit=min(cap, 56 << 20), split_for_two_cores=True)


def _pick_tile_n(n, c, in_bytes, data_budget, max_tile, split_for_two_cores):
    """Largest sublane-aligned row tile whose working set fits the VMEM budget."""
    align = 32 if in_bytes == 1 else 16          # bf16 packs 2 rows per sublane
    if n < align:
        return n                                 # full-extent block (always legal)

    c_vmem = max(((c + 127) // 128) * 128, 128)  # lane-padded width in VMEM
    # Per-row bytes:
    #   logits in  : 2 (double buffer) * c_vmem * in_bytes
    #   scaled out : 2 (double buffer) * c_vmem * in_bytes
    #   f32 temps  : x and z / exp(z) live across the reductions (~20 B/elem)
    #   (TN,1) labels-in + CE-out, each lane-padded to 128 and double-buffered:
    #       2 arrays * 2 buffers * 128 lanes * 4 B = 2048 B/row
    bytes_per_row = c_vmem * (4 * in_bytes + 20) + 2048

    t = min(n, max_tile, max(align, data_budget // max(1, bytes_per_row)))
    t = max(align, (t // align) * align)

    if split_for_two_cores and n >= 2 * align:
        # Keep grid_n >= 2 so both v7x TensorCores get work under "parallel".
        half = ((-(-n // 2) + align - 1) // align) * align
        t = min(t, half)

    return min(t, n)


def temperature_scale_forward(logits, labels, temperature, *, tile_n=None,
                              donate_logits=False):
    """Pallas implementation of Temperature_scale.forward.

    logits:      (N, C) float32 or bfloat16
    labels:      (N,)   int32
    temperature: scalar float
    returns (scaled_logits (N, C) in logits.dtype, loss scalar f32, None)
    """
    N, C = logits.shape
    in_dtype = logits.dtype
    in_bytes = jnp.dtype(in_dtype).itemsize

    gen = _gen_params()
    if tile_n is None:
        tile_n = _pick_tile_n(N, C, in_bytes, gen["data_budget"],
                              gen["max_tile"], gen["split_for_two_cores"])
    grid_n = pl.cdiv(N, tile_n)

    temp_arr = jnp.asarray([temperature], dtype=jnp.float32)
    # Labels as a tiny (N, 1) int32 side input; its DMA is negligible next to
    # the logits tiles and arrives sublane-aligned for the one-hot comparison.
    labels2d = labels.astype(jnp.int32).reshape(N, 1)

    # Optionally alias the logits input (call-arg index 1: the scalar-prefetch
    # temperature is arg 0) to the scaled output to avoid an extra N*C HBM
    # allocation when the caller does not need the original logits.
    io_aliases = {1: 0} if donate_logits else {}

    scaled, ce_rows = pl.pallas_call(
        _temp_scale_kernel,
        out_shape=(
            jax.ShapeDtypeStruct((N, C), in_dtype),      # scaled logits
            jax.ShapeDtypeStruct((N, 1), jnp.float32),   # per-row CE
        ),
        grid_spec=pltpu.PrefetchScalarGridSpec(
            num_scalar_prefetch=1,                       # temperature -> SMEM
            grid=(grid_n,),
            in_specs=[
                pl.BlockSpec((tile_n, C), lambda i, t: (i, 0)),  # logits tile
                pl.BlockSpec((tile_n, 1), lambda i, t: (i, 0)),  # labels tile
            ],
            out_specs=[
                pl.BlockSpec((tile_n, C), lambda i, t: (i, 0)),  # scaled tile
                pl.BlockSpec((tile_n, 1), lambda i, t: (i, 0)),  # per-row CE
            ],
        ),
        compiler_params=pltpu.CompilerParams(
            # No cross-tile state -> row tiles are independent; lets v7x shard
            # the grid across both TensorCores (no effect on v5e/v6e).
            dimension_semantics=("parallel",),
            vmem_limit_bytes=gen["vmem_limit"],
        ),
        input_output_aliases=io_aliases,
    )(temp_arr, logits, labels2d)

    # Final mean reduction of the per-row CE in plain JAX (tiny (N,1) array).
    loss = jnp.sum(ce_rows) / jnp.float32(N)

    # TODO(synk): PyTorch keeps the temperature parameter in float64; TPU has
    # no f64 vector path so the forward is computed in f32.
    return scaled, loss, None


if __name__ == "__main__":
    key = jax.random.PRNGKey(0)
    k1, k2 = jax.random.split(key)

    N, C = 64, 10                      # small demo: batch=64, 10 classes
    logits = jax.random.normal(k1, (N, C), dtype=jnp.float32) * 3.0
    labels = jax.random.randint(k2, (N,), 0, C, dtype=jnp.int32)
    temperature = 1.5                  # nn.Parameter(torch.ones(1)*1.5)

    scaled, loss, softmaxed = temperature_scale_forward(logits, labels, temperature)
    scaled = jax.block_until_ready(scaled)
    loss = jax.block_until_ready(loss)

    # Pure-JAX reference check (temperature scaling + mean cross entropy)
    ref_scaled = logits / temperature
    ref_logp = jax.nn.log_softmax(ref_scaled, axis=-1)
    ref_loss = -jnp.mean(ref_logp[jnp.arange(N), labels])

    assert jnp.allclose(scaled, ref_scaled, atol=1e-5, rtol=1e-5)
    assert jnp.allclose(loss, ref_loss, atol=1e-5, rtol=1e-5)
    assert softmaxed is None

    print("KERNEL_OK")
</pallas_src>

<mosaic_0001>
module attributes {stable_mosaic.version = 11 : i64} {
  func.func @_temp_scale_kernel(%arg0: i32, %arg1: memref<1xf32, #tpu.memory_space<smem>>, %arg2: memref<32x10xf32, #tpu.memory_space<vmem>>, %arg3: memref<32x1xi32, #tpu.memory_space<vmem>>, %arg4: memref<32x10xf32, #tpu.memory_space<vmem>>, %arg5: memref<32x1xf32, #tpu.memory_space<vmem>>) attributes {dimension_semantics = [#tpu.dimension_semantics<parallel>], iteration_bounds = array<i64: 2>, scalar_prefetch = 1 : i64, scratch_operands = 0 : i64, tpu.core_type = #tpu.core_type<tc>, window_params = [{transform_indices = @transform_0, window_bounds = array<i64: 32, 10>}, {transform_indices = @transform_1, window_bounds = array<i64: 32, 1>}, {transform_indices = @transform_2, window_bounds = array<i64: 32, 10>}, {transform_indices = @transform_3, window_bounds = array<i64: 32, 1>}]} {
    %c0 = arith.constant 0 : index
    %0 = memref.load %arg1[%c0] : memref<1xf32, #tpu.memory_space<smem>>
    %cst = arith.constant 1.000000e+00 : f32
    %1 = arith.divf %cst, %0 : f32
    %c0_0 = arith.constant 0 : index
    %c0_1 = arith.constant 0 : index
    %2 = vector.load %arg2[%c0_0, %c0_1] : memref<32x10xf32, #tpu.memory_space<vmem>>, vector<32x10xf32>
    %3 = vector.broadcast %1 : f32 to vector<32x10xf32>
    %4 = arith.mulf %2, %3 : vector<32x10xf32>
    %c0_2 = arith.constant 0 : index
    %c0_3 = arith.constant 0 : index
    %5 = vector.load %arg4[%c0_2, %c0_3] : memref<32x10xf32, #tpu.memory_space<vmem>>, vector<32x10xf32>
    tpu.vector_store %arg4[%c0_2, %c0_3], %4 {strides = array<i32>} : memref<32x10xf32, #tpu.memory_space<vmem>>, vector<32x10xf32>,
    %cst_4 = arith.constant dense<0xFF800000> : vector<32xf32>
    %6 = vector.multi_reduction <maximumf>, %4, %cst_4 [1] : vector<32x10xf32> to vector<32xf32>
    %7 = vector.shape_cast %6 : vector<32xf32> to vector<32x1xf32>
    %8 = vector.broadcast %7 : vector<32x1xf32> to vector<32x10xf32>
    %9 = arith.subf %4, %8 : vector<32x10xf32>
    %10 = math.exp %9 : vector<32x10xf32>
    %cst_5 = arith.constant dense<0.000000e+00> : vector<32xf32>
    %11 = vector.multi_reduction <add>, %10, %cst_5 [1] : vector<32x10xf32> to vector<32xf32>
    %12 = vector.shape_cast %11 : vector<32xf32> to vector<32x1xf32>
    %13 = math.log %12 : vector<32x1xf32>
    %c0_6 = arith.constant 0 : index
    %c0_7 = arith.constant 0 : index
    %14 = vector.load %arg3[%c0_6, %c0_7] : memref<32x1xi32, #tpu.memory_space<vmem>>, vector<32x1xi32>
    %15 = tpu.iota {dimensions = array<i32: 1>} : vector<32x10xi32>
    %16 = vector.broadcast %14 : vector<32x1xi32> to vector<32x10xi32>
    %17 = arith.cmpi eq, %15, %16 : vector<32x10xi32>
    %cst_8 = arith.constant 0.000000e+00 : f32
    %18 = vector.broadcast %cst_8 : f32 to vector<32x10xf32>
    %19 = arith.select %17, %9, %18 : vector<32x10xi1>, vector<32x10xf32>
    %cst_9 = arith.constant dense<0.000000e+00> : vector<32xf32>
    %20 = vector.multi_reduction <add>, %19, %cst_9 [1] : vector<32x10xf32> to vector<32xf32>
    %21 = vector.shape_cast %20 : vector<32xf32> to vector<32x1xf32>
    %22 = arith.subf %13, %21 : vector<32x1xf32>
    %c0_10 = arith.constant 0 : index
    %c0_11 = arith.constant 0 : index
    %23 = vector.load %arg5[%c0_10, %c0_11] : memref<32x1xf32, #tpu.memory_space<vmem>>, vector<32x1xf32>
    tpu.vector_store %arg5[%c0_10, %c0_11], %22 {strides = array<i32>} : memref<32x1xf32, #tpu.memory_space<vmem>>, vector<32x1xf32>,
    return
  }
  func.func @transform_0(%arg0: i32, %arg1: memref<1xf32, #tpu.memory_space<smem>>) -> (i32, i32) {
    %c0_i32 = arith.constant 0 : i32
    %c0_i32_0 = arith.constant 0 : i32
    return %arg0, %c0_i32 : i32, i32
  }
  func.func @transform_1(%arg0: i32, %arg1: memref<1xf32, #tpu.memory_space<smem>>) -> (i32, i32) {
    %c0_i32 = arith.constant 0 : i32
    %c0_i32_0 = arith.constant 0 : i32
    return %arg0, %c0_i32 : i32, i32
  }
  func.func @transform_2(%arg0: i32, %arg1: memref<1xf32, #tpu.memory_space<smem>>) -> (i32, i32) {
    %c0_i32 = arith.constant 0 : i32
    %c0_i32_0 = arith.constant 0 : i32
    return %arg0, %c0_i32 : i32, i32
  }
  func.func @transform_3(%arg0: i32, %arg1: memref<1xf32, #tpu.memory_space<smem>>) -> (i32, i32) {
    %c0_i32 = arith.constant 0 : i32
    %c0_i32_0 = arith.constant 0 : i32
    return %arg0, %c0_i32 : i32, i32
  }
}

</mosaic_0001>

<bundles_post_ra>
// kernel: tpu_custom_call.1
= control target key start
LH: loop header
LB: loop body
LE: loop exit
PB: predicated region body
PF: predicated region fallthrough
CT: control target
= control target key end

     0   :  { %s506_s17 = smov 0   ;;  %s561_s0 = inlined_call_operand.<no memory space> [shape: f32[1], index: 0, kind: input, shape index: {}]   ;;  %s562_s1 = inlined_call_operand.vmem [shape: f32[64,10], index: 1, kind: input, shape index: {}]   ;;  %s563_s2 = inlined_call_operand.vmem [shape: s32[64,1], index: 2, kind: input, shape index: {}]   ;;  %s564_s3 = inlined_call_operand.vmem [shape: f32[64,10], index: 3, kind: output, shape index: {0}]   ;;  %s565_s4 = inlined_call_operand.vmem [shape: f32[64,1], index: 4, kind: output, shape index: {1}]  }
   0x1   :  { %10 = sst [smem:[#allocation3]] %s561_s0 }
   0x2 LB: > { %s423_s18 = sadd.s32 4294967295, %s475_s17   ;;  %p427_p0 = scmp.ge.s32.totalorder %s475_s17, 1  ;;  %s475_s17 = sphi %s506_s17, %s16_s17  }
   0x3   : > { %p154_p1 = scmp.lt.s32.totalorder %s475_s17, 3 }
   0x5   : > { %p155_p2 = pnand %p427_p0, %p154_p1 }
   0x6   : > { %s212_s19 = sld [smem:[#allocation3]] (!%p155_p2)  ;;  %s428_s20 = sshll.u32 (!%p155_p2), %s423_s18, 2  ;;  %v477_v0 = vmov (!%p155_p2), 0   ;;  %vm225_vm0 = vcmask (!%p155_p2), 80896   ;;  %v278_v34 = vlaneseq (!%p155_p2)  ;;  %vm316_vm5 = vcmask (!%p155_p2), 7168  }
   0x7   : > { %158 = sbr.rel (%p155_p2) target bundleno = 402 (0x192), region = 28  ;;  %450 = vset.pattern.permute.xlu1 (!%p155_p2), %v477_v0  ;;  %p189_p3 = scmp.lt.s32.totalorder (!%p155_p2), %s428_s20, 7  ;;  %449 = vset.pattern.permute.xlu0 (!%p155_p2), %v477_v0 }
   0x8   : > { %v279_v36 = vand.u32 (!%p155_p2), 127, %v278_v34 }
   0xc   : > { %v213_v1 = vstv (!%p155_p2), %s212_s19 }
   0xd   : > { %451 = vrcp.f32 (!%p155_p2), %v213_v1 }
   0xe   : > { %s567_s20 = smov (!%p189_p3, %s428_s20), 7 }
   0xf   : > { %s514_s0 = sshll.u32 %s567_s20, 3 }
  0x10   : > { %s520_s23 = scalar_lea.vmem %s563_s2, %s514_s0  ;;  %s192_s26 = scalar_lea.vmem %s562_s1, %s514_s0 }
  0x11   : > { %v275_v2 = vld [vmem:[%s520_s23 + $0x8] sm:$0xff]  ;;  %v276_v3 = vld [vmem:[%s520_s23 + $0x10] sm:$0xff]  ;;  %v216_v5 = vld [vmem:[%s192_s26] sm:$0xff]  ;;  %s204_s30 = scalar_lea.vmem %s564_s3, %s514_s0  ;;  %s210_s7 = scalar_lea.vmem %s565_s4, %s514_s0 }
  0x12   : > { %284 = vperm.xlu1 %450, %v275_v2   ;;  %v217_v6 = vld [vmem:[%s192_s26 + $0x8] sm:$0xff]  ;;  %v218_v7 = vld [vmem:[%s192_s26 + $0x10] sm:$0xff]  ;;  %v219_v8 = vld [vmem:[%s192_s26 + $0x18] sm:$0xff] }
  0x13   : > { %v277_v18 = vld [vmem:[%s520_s23 + $0x18] sm:$0xff]  ;;  %v274_v19 = vld [vmem:[%s520_s23] sm:$0xff] }
  0x16   : > { %287 = vperm.xlu1 %450, %v276_v3  }
  0x17   : > { %v452_v4 = vpop.eup %451 }
  0x18   : > { %438 = vpush %v452_v4 }
  0x49   : > { %s439_s27 = spop %438 }
  0x4a   : > { %v220_v9 = vstv %s439_s27 }
  0x4b   : > { %v221_v10 = vmul.f32 %v220_v9, %v216_v5  ;;  %v222_v11 = vmul.f32 %v220_v9, %v217_v6  ;;  %v223_v12 = vmul.f32 %v220_v9, %v218_v7  ;;  %v224_v13 = vmul.f32 %v220_v9, %v219_v8 }
  0x4d   : > { %226 = vst.msk [vmem:[%s204_s30] sm:$0xff] %vm225_vm0, %v221_v10  ;;  %v236_v14 = vsel %vm225_vm0, %v223_v12, -inf  ;;  %v230_v15 = vsel %vm225_vm0, %v221_v10, -inf  ;;  %227 = vst.msk [vmem:[%s204_s30 + $0x8] sm:$0xff] %vm225_vm0, %v222_v11  ;;  %v239_v16 = vsel %vm225_vm0, %v224_v13, -inf  ;;  %v233_v17 = vsel %vm225_vm0, %v222_v11, -inf }
  0x4e   : > { %237 = vmax.xlane.f32.xlu1 %v236_v14  ;;  %231 = vmax.xlane.f32.xlu0 %v230_v15  ;;  %228 = vst.msk [vmem:[%s204_s30 + $0x10] sm:$0xff] %vm225_vm0, %v223_v12  ;;  %229 = vst.msk [vmem:[%s204_s30 + $0x18] sm:$0xff] %vm225_vm0, %v224_v13 }
  0x52   : > { %240 = vmax.xlane.f32.xlu1 %v239_v16  ;;  %234 = vmax.xlane.f32.xlu0 %v233_v17 }
  0x63   : > { %290 = vperm.xlu1 %450, %v277_v18  }
  0x68   : > { %281 = vperm.xlu0 %449, %v274_v19  }
  0x91   : > { %v285_v20 = vpop.permute.xlu1 %284 }
  0x92   : > { %vm293_vm3 = vcmp.eq.s32.totalorder %v279_v36, %v285_v20 }
  0x95   : > { %v288_v21 = vpop.permute.xlu1 %287 }
  0x96   : > { %vm294_vm1 = vcmp.eq.s32.totalorder %v279_v36, %v288_v21 }
  0xdb   : > { %v238_v22 = vpop.xlane.xlu1 %237  ;;  %v232_v23 = vpop.xlane.xlu0 %231 }
  0xdc   : > { %v244_v24 = vsub.f32 %v223_v12, %v238_v22  ;;  %v242_v25 = vsub.f32 %v221_v10, %v232_v23 }
  0xde   : > { %v246_v26 = vmul.f32 1.442695, %v242_v25  ;;  %v250_v27 = vmul.f32 1.442695, %v244_v24  ;;  %v298_v44 = vsel %vm294_vm1, %v244_v24, 0.0 }
  0xdf   : > { %v241_v28 = vpop.xlane.xlu1 %240  ;;  %v235_v29 = vpop.xlane.xlu0 %234  ;;  %v306_v46 = vsel %vm225_vm0, %v298_v44, 0.0 }
  0xe0   : > { %v245_v30 = vsub.f32 %v224_v13, %v241_v28  ;;  %v243_v31 = vsub.f32 %v222_v11, %v235_v29  ;;  %453 = vpow2.f32 %v246_v26 }
  0xe1   : > { %455 = vpow2.f32 %v250_v27 }
  0xe2   : > { %v248_v32 = vmul.f32 1.442695, %v243_v31  ;;  %v252_v33 = vmul.f32 1.442695, %v245_v30  ;;  %v297_v50 = vsel %vm293_vm3, %v243_v31, 0.0 }
  0xe3   : > { %v291_v48 = vpop.permute.xlu1 %290  ;;  %v303_v51 = vsel %vm225_vm0, %v297_v50, 0.0 }
  0xe4   : > { %457 = vpow2.f32 %v248_v32  ;;  %vm295_vm4 = vcmp.eq.s32.totalorder %v279_v36, %v291_v48 }
  0xe5   : > { %459 = vpow2.f32 %v252_v33  ;;  %v299_v52 = vsel %vm295_vm4, %v245_v30, 0.0 }
  0xe6   : > { %v309_v53 = vsel %vm225_vm0, %v299_v52, 0.0 }
  0xe7   : > { %v282_v40 = vpop.permute.xlu0 %281 }
  0xe8   : > { %vm292_vm2 = vcmp.eq.s32.totalorder %v279_v36, %v282_v40 }
  0xe9   : > { %v296_v47 = vsel %vm292_vm2, %v242_v25, 0.0 }
  0xea   : > { %v454_v35 = vpop.eup %453  ;;  %v300_v49 = vsel %vm225_vm0, %v296_v47, 0.0 }
  0xeb   : > { %v254_v37 = vsel %vm225_vm0, %v454_v35, 0.0  ;;  %v456_v38 = vpop.eup %455 }
  0xec   : > { %255 = vadd.xlane.f32.xlu1 %v254_v37  ;;  %v260_v41 = vsel %vm225_vm0, %v456_v38, 0.0 }
  0xee   : > { %v458_v39 = vpop.eup %457 }
  0xef   : > { %v257_v42 = vsel %vm225_vm0, %v458_v39, 0.0  ;;  %v460_v43 = vpop.eup %459 }
  0xf0   : > { %261 = vadd.xlane.f32.xlu1 %v260_v41  ;;  %258 = vadd.xlane.f32.xlu0 %v257_v42  ;;  %v263_v45 = vsel %vm225_vm0, %v460_v43, 0.0 }
  0xf4   : > { %264 = vadd.xlane.f32.xlu1 %v263_v45  ;;  %307 = vadd.xlane.f32.xlu0 %v306_v46 }
  0xf8   : > { %301 = vadd.xlane.f32.xlu1 %v300_v49 }
  0xfc   : > { %304 = vadd.xlane.f32.xlu1 %v303_v51 }
 0x100   : > { %310 = vadd.xlane.f32.xlu1 %v309_v53 }
 0x179   : > { %v256_v54 = vpop.xlane.xlu1 %255 }
 0x17a   : > { %461 = vlog2.f32 %v256_v54 }
 0x17d   : > { %v262_v55 = vpop.xlane.xlu1 %261  ;;  %v259_v56 = vpop.xlane.xlu0 %258 }
 0x17e   : > { %463 = vlog2.f32 %v262_v55 }
 0x17f   : > { %465 = vlog2.f32 %v259_v56 }
 0x181   : > { %v265_v57 = vpop.xlane.xlu1 %264  ;;  %v308_v2 = vpop.xlane.xlu0 %307 }
 0x182   : > { %467 = vlog2.f32 %v265_v57 }
 0x184   : > { %v462_v58 = vpop.eup %461 }
 0x185   : > { %v267_v59 = vmul.f32 0.6931472, %v462_v58  ;;  %v302_v60 = vpop.xlane.xlu1 %301 }
 0x187   : > { %v312_v61 = vsub.f32 %v267_v59, %v302_v60 }
 0x188   : > { %v464_v62 = vpop.eup %463 }
 0x189   : > { %v466_v63 = vpop.eup %465  ;;  %v271_v0 = vmul.f32 0.6931472, %v464_v62  ;;  %317 = vst.msk [vmem:[%s210_s7] sm:$0xff] %vm316_vm5, %v312_v61  ;;  %v305_v1 = vpop.xlane.xlu1 %304 }
 0x18a   : > { %v269_v3 = vmul.f32 0.6931472, %v466_v63 }
 0x18b   : > { %v314_v4 = vsub.f32 %v271_v0, %v308_v2 }
 0x18c   : > { %v468_v5 = vpop.eup %467  ;;  %v313_v6 = vsub.f32 %v269_v3, %v305_v1 }
 0x18d   : > { %v273_v7 = vmul.f32 0.6931472, %v468_v5  ;;  %v311_v8 = vpop.xlane.xlu1 %310  ;;  %319 = vst.msk [vmem:[%s210_s7 + $0x10] sm:$0xff] %vm316_vm5, %v314_v4 }
 0x18e   : > { %318 = vst.msk [vmem:[%s210_s7 + $0x8] sm:$0xff] %vm316_vm5, %v313_v6 }
 0x18f   : > { %v315_v9 = vsub.f32 %v273_v7, %v311_v8 }
 0x191   : > { %320 = vst.msk [vmem:[%s210_s7 + $0x18] sm:$0xff] %vm316_vm5, %v315_v9 }
 0x192 PF: > { %s16_s17 = sadd.s32 1, %s475_s17  }
 0x193   : > { %p13_p4 = scmp.ge.s32.totalorder %s16_s17, 4  }
 0x195   :  { %15 = sbr.rel (!%p13_p4) target bundleno = 2 (0x2), region = 73 }

</bundles_post_ra>
